<compile_context>
chip_gen: v6e
topology: v6e:2x2x1
jax: 0.10.0
libtpu: 0.0.40
codegen_flags: <defaults>
</compile_context>

<pallas_src>
import functools
import math

import jax
import jax.numpy as jnp
from jax.experimental import pallas as pl
from jax.experimental.pallas import tpu as pltpu


def _round_up(n, m):
    return ((n + m - 1) // m) * m


def _cdiv(a, b):
    return -(-a // b)


def _project_head_kernel(x_ref, w_ref, b_ref, o_ref, *, out_dim, pack):
    x = x_ref[...]                        # (TB, IN)      f32
    w = w_ref[...]                        # (IN, OUT_P)   f32 (pre-transposed, zero-padded cols)
    b = b_ref[...]                        # (1, OUT_P)    f32 (-inf on padded lanes)

    # fc1: x @ W + b on the MXU, f32 accumulation. No in-kernel transpose.
    logits = jnp.dot(x, w, preferred_element_type=jnp.float32) + b   # (TB, OUT_P)

    # Numerically stable softmax over lanes. Padded lanes: logit = -inf, and
    # every row has at least one finite real logit, so exp(-inf - m) == 0
    # exactly and padded lanes contribute nothing to the denominator.
    m = jnp.max(logits, axis=-1, keepdims=True)
    e = jnp.exp(logits - m)
    s = jnp.sum(e, axis=-1, keepdims=True)
    probs = e / s                         # exact divide: rows sum to 1 to f32 precision

    if pack == 1:
        # Padded lane-dense slab; wrapper slices off the fake lanes.
        o_ref[...] = probs.astype(o_ref.dtype)
    else:
        # Pack `pack` consecutive rows' real OUT outputs densely into one
        # 128-lane row: packed[r, j*OUT + c] = probs[pack*r + j, c].
        # Padded lanes of `probs` are exactly 0, so only real values move.
        tb, out_p = probs.shape
        p3 = probs.reshape(tb // pack, pack, out_p)
        pieces = [p3[:, j, :out_dim] for j in range(pack)]      # each (tb//pack, OUT)
        packed = jnp.concatenate(pieces, axis=-1)               # (tb//pack, pack*OUT == OUT_P)
        o_ref[...] = packed.astype(o_ref.dtype)


def mnist_project_head_forward(x, weight, bias, *, batch_tile=4096):
    """x: (B, IN) f32; weight: (OUT, IN) f32 (PyTorch layout); bias: (OUT,) f32.

    Returns softmax(x @ weight.T + bias, axis=-1) of shape (B, OUT).
    """
    B, IN = x.shape
    OUT = weight.shape[0]

    LANES = 128
    out_p = _round_up(max(OUT, LANES), LANES)     # lane-dense output width

    # Row-packing factor: only when OUT tiles a single 128-lane row exactly.
    if out_p == LANES and LANES % OUT == 0 and (LANES // OUT) <= 8:
        pack = LANES // OUT
    else:
        pack = 1

    # One-time wrapper-side layout work: transpose to (IN, OUT), pad OUT axis.
    # Padded weight columns = 0, padded bias = -inf => padded logits = -inf.
    w_t = weight.T.astype(jnp.float32)                                  # (IN, OUT)
    w_pad = jnp.zeros((IN, out_p), jnp.float32).at[:, :OUT].set(w_t)    # (IN, OUT_P)
    b_pad = jnp.full((1, out_p), -jnp.inf, jnp.float32).at[0, :OUT].set(
        bias.astype(jnp.float32))                                       # (1, OUT_P)

    # --- Batch tile selection -------------------------------------------------
    # Alignment so the x block (TB, IN) and the packed out block (TB//pack, 128)
    # both satisfy the (8, 128) sublane rule.
    row_align = 8 * pack
    # Cap TB so double-buffered x + out tiles stay well under v5e's 16 MiB
    # default scoped VMEM (weight/bias are resident and tiny).
    per_row_bytes = 4 * (IN + out_p // pack)
    vmem_budget = 12 * 1024 * 1024
    tb_cap = max(row_align,
                 (vmem_budget // (2 * per_row_bytes)) // row_align * row_align)
    tile = max(row_align, min(batch_tile, tb_cap))

    # Near-even split of B over the grid: waste < row_align rows per tile
    # (avoids the old round_up(B, TB) near-doubling for unlucky batch sizes).
    ntiles = _cdiv(B, tile)
    TB = _round_up(_cdiv(B, ntiles), row_align)
    Bp = ntiles * TB

    x_f = x.astype(jnp.float32)
    x_pad = x_f if Bp == B else jnp.pad(x_f, ((0, Bp - B), (0, 0)))

    kernel = functools.partial(_project_head_kernel, out_dim=OUT, pack=pack)

    cost = pl.CostEstimate(
        flops=2 * Bp * IN * out_p,
        transcendentals=Bp * out_p,
        bytes_accessed=4 * (Bp * IN + IN * out_p + out_p + (Bp // pack) * out_p),
    )

    out = pl.pallas_call(
        kernel,
        out_shape=jax.ShapeDtypeStruct((Bp // pack, out_p), jnp.float32),
        grid=(ntiles,),
        in_specs=[
            pl.BlockSpec((TB, IN), lambda i: (i, 0)),        # x: streamed over batch
            pl.BlockSpec((IN, out_p), lambda i: (0, 0)),     # weight: resident
            pl.BlockSpec((1, out_p), lambda i: (0, 0)),      # bias: resident
        ],
        out_specs=pl.BlockSpec((TB // pack, out_p), lambda i: (i, 0)),
        compiler_params=pltpu.CompilerParams(
            dimension_semantics=("parallel",),   # batch axis independent across TCs
        ),
        cost_estimate=cost,
    )(x_pad, w_pad, b_pad)

    if pack == 1:
        return out[:B, :OUT]
    # Unpack: (Bp/pack, pack*OUT) row-major -> (Bp, OUT), then drop padded rows.
    return out.reshape(Bp, OUT)[:B]


if __name__ == "__main__":
    # Small shapes consistent with the module: fc1(input=32, output=16)
    B, IN, OUT = 8, 32, 16

    key = jax.random.PRNGKey(0)
    kx, kw, kb = jax.random.split(key, 3)

    # Deterministic init mimicking nn.Linear's default U(-1/sqrt(in), 1/sqrt(in))
    bound = 1.0 / math.sqrt(IN)
    weight = jax.random.uniform(kw, (OUT, IN), jnp.float32, -bound, bound)
    bias = jax.random.uniform(kb, (OUT,), jnp.float32, -bound, bound)
    x = jax.random.normal(kx, (B, IN), jnp.float32)

    out = mnist_project_head_forward(x, weight, bias)
    out = jax.block_until_ready(out)

    # Reference check in plain JAX.
    ref = jax.nn.softmax(x @ weight.T + bias, axis=-1)
    assert out.shape == (B, OUT)
    assert jnp.allclose(out, ref, atol=2e-3, rtol=2e-3)
    # Exact divide in the kernel -> rows sum to 1 to f32 precision.
    assert jnp.allclose(jnp.sum(out, axis=-1), 1.0, atol=1e-4)

    print("KERNEL_OK")
</pallas_src>

<mosaic_0001>
module attributes {stable_mosaic.version = 11 : i64} {
  func.func @_project_head_kernel(%arg0: i32, %arg1: memref<64x32xf32, #tpu.memory_space<vmem>>, %arg2: memref<32x128xf32, #tpu.memory_space<vmem>>, %arg3: memref<1x128xf32, #tpu.memory_space<vmem>>, %arg4: memref<8x128xf32, #tpu.memory_space<vmem>>) attributes {dimension_semantics = [#tpu.dimension_semantics<parallel>], iteration_bounds = array<i64: 1>, scalar_prefetch = 0 : i64, scratch_operands = 0 : i64, tpu.core_type = #tpu.core_type<tc>, window_params = [{transform_indices = @transform_0, window_bounds = array<i64: 64, 32>}, {pipeline_mode = #tpu.pipeline_mode<synchronous>, transform_indices = @transform_1, window_bounds = array<i64: 32, 128>}, {pipeline_mode = #tpu.pipeline_mode<synchronous>, transform_indices = @transform_2, window_bounds = array<i64: 1, 128>}, {transform_indices = @transform_3, window_bounds = array<i64: 8, 128>}]} {
    %c0 = arith.constant 0 : index
    %c0_0 = arith.constant 0 : index
    %0 = vector.load %arg1[%c0, %c0_0] : memref<64x32xf32, #tpu.memory_space<vmem>>, vector<64x32xf32>
    %c0_1 = arith.constant 0 : index
    %c0_2 = arith.constant 0 : index
    %1 = vector.load %arg2[%c0_1, %c0_2] : memref<32x128xf32, #tpu.memory_space<vmem>>, vector<32x128xf32>
    %c0_3 = arith.constant 0 : index
    %c0_4 = arith.constant 0 : index
    %2 = vector.load %arg3[%c0_3, %c0_4] : memref<1x128xf32, #tpu.memory_space<vmem>>, vector<1x128xf32>
    %cst = arith.constant dense<0.000000e+00> : vector<64x128xf32>
    %3 = tpu.matmul %0, %1, %cst {dimension_numbers = #tpu.dot_dimension_numbers<[1], [0], [0], [1], [0, 0, 1, 1], [], []>} : vector<64x32xf32>, vector<32x128xf32>, vector<64x128xf32> -> vector<64x128xf32>
    %4 = vector.broadcast %2 : vector<1x128xf32> to vector<64x128xf32>
    %5 = arith.addf %3, %4 : vector<64x128xf32>
    %cst_5 = arith.constant dense<0xFF800000> : vector<64xf32>
    %6 = vector.multi_reduction <maximumf>, %5, %cst_5 [1] : vector<64x128xf32> to vector<64xf32>
    %7 = vector.shape_cast %6 : vector<64xf32> to vector<64x1xf32>
    %8 = vector.broadcast %7 : vector<64x1xf32> to vector<64x128xf32>
    %9 = arith.subf %5, %8 : vector<64x128xf32>
    %10 = math.exp %9 : vector<64x128xf32>
    %cst_6 = arith.constant dense<0.000000e+00> : vector<64xf32>
    %11 = vector.multi_reduction <add>, %10, %cst_6 [1] : vector<64x128xf32> to vector<64xf32>
    %12 = vector.shape_cast %11 : vector<64xf32> to vector<64x1xf32>
    %13 = vector.broadcast %12 : vector<64x1xf32> to vector<64x128xf32>
    %14 = arith.divf %10, %13 : vector<64x128xf32>
    %15 = vector.shape_cast %14 : vector<64x128xf32> to vector<8x8x128xf32>
    %16 = vector.extract_strided_slice %15 {offsets = [0, 0, 0], sizes = [8, 1, 16], strides = [1, 1, 1]} : vector<8x8x128xf32> to vector<8x1x16xf32>
    %17 = vector.shape_cast %16 : vector<8x1x16xf32> to vector<8x16xf32>
    %18 = vector.extract_strided_slice %15 {offsets = [0, 1, 0], sizes = [8, 1, 16], strides = [1, 1, 1]} : vector<8x8x128xf32> to vector<8x1x16xf32>
    %19 = vector.shape_cast %18 : vector<8x1x16xf32> to vector<8x16xf32>
    %20 = vector.extract_strided_slice %15 {offsets = [0, 2, 0], sizes = [8, 1, 16], strides = [1, 1, 1]} : vector<8x8x128xf32> to vector<8x1x16xf32>
    %21 = vector.shape_cast %20 : vector<8x1x16xf32> to vector<8x16xf32>
    %22 = vector.extract_strided_slice %15 {offsets = [0, 3, 0], sizes = [8, 1, 16], strides = [1, 1, 1]} : vector<8x8x128xf32> to vector<8x1x16xf32>
    %23 = vector.shape_cast %22 : vector<8x1x16xf32> to vector<8x16xf32>
    %24 = vector.extract_strided_slice %15 {offsets = [0, 4, 0], sizes = [8, 1, 16], strides = [1, 1, 1]} : vector<8x8x128xf32> to vector<8x1x16xf32>
    %25 = vector.shape_cast %24 : vector<8x1x16xf32> to vector<8x16xf32>
    %26 = vector.extract_strided_slice %15 {offsets = [0, 5, 0], sizes = [8, 1, 16], strides = [1, 1, 1]} : vector<8x8x128xf32> to vector<8x1x16xf32>
    %27 = vector.shape_cast %26 : vector<8x1x16xf32> to vector<8x16xf32>
    %28 = vector.extract_strided_slice %15 {offsets = [0, 6, 0], sizes = [8, 1, 16], strides = [1, 1, 1]} : vector<8x8x128xf32> to vector<8x1x16xf32>
    %29 = vector.shape_cast %28 : vector<8x1x16xf32> to vector<8x16xf32>
    %30 = vector.extract_strided_slice %15 {offsets = [0, 7, 0], sizes = [8, 1, 16], strides = [1, 1, 1]} : vector<8x8x128xf32> to vector<8x1x16xf32>
    %31 = vector.shape_cast %30 : vector<8x1x16xf32> to vector<8x16xf32>
    %32 = tpu.concatenate %17, %19, %21, %23, %25, %27, %29, %31 in 1 : vector<8x16xf32>, vector<8x16xf32>, vector<8x16xf32>, vector<8x16xf32>, vector<8x16xf32>, vector<8x16xf32>, vector<8x16xf32>, vector<8x16xf32> -> vector<8x128xf32>
    %c0_7 = arith.constant 0 : index
    %c0_8 = arith.constant 0 : index
    %33 = vector.load %arg4[%c0_7, %c0_8] : memref<8x128xf32, #tpu.memory_space<vmem>>, vector<8x128xf32>
    tpu.vector_store %arg4[%c0_7, %c0_8], %32 {strides = array<i32>} : memref<8x128xf32, #tpu.memory_space<vmem>>, vector<8x128xf32>,
    return
  }
  func.func @transform_0(%arg0: i32) -> (i32, i32) {
    %c0_i32 = arith.constant 0 : i32
    %c0_i32_0 = arith.constant 0 : i32
    return %arg0, %c0_i32 : i32, i32
  }
  func.func @transform_1(%arg0: i32) -> (i32, i32) {
    %c0_i32 = arith.constant 0 : i32
    %c0_i32_0 = arith.constant 0 : i32
    %c0_i32_1 = arith.constant 0 : i32
    return %c0_i32, %c0_i32_0 : i32, i32
  }
  func.func @transform_2(%arg0: i32) -> (i32, i32) {
    %c0_i32 = arith.constant 0 : i32
    %c0_i32_0 = arith.constant 0 : i32
    %c0_i32_1 = arith.constant 0 : i32
    return %c0_i32, %c0_i32_0 : i32, i32
  }
  func.func @transform_3(%arg0: i32) -> (i32, i32) {
    %c0_i32 = arith.constant 0 : i32
    %c0_i32_0 = arith.constant 0 : i32
    return %arg0, %c0_i32 : i32, i32
  }
}

</mosaic_0001>

<bundles_post_ra>
// kernel: tpu_custom_call.1
= control target key start
LH: loop header
LB: loop body
LE: loop exit
PB: predicated region body
PF: predicated region fallthrough
CT: control target
= control target key end

     0   :  { %vm34_vm0 = vcmask 261120   ;;  %s761_s0 = inlined_call_operand.vmem [shape: f32[64,32], index: 0, kind: input, shape index: {}]   ;;  %s762_s1 = inlined_call_operand.vmem [shape: f32[32,128], index: 1, kind: input, shape index: {}]   ;;  %s763_s2 = inlined_call_operand.vmem [shape: f32[1,128], index: 2, kind: input, shape index: {}]   ;;  %s764_s3 = inlined_call_operand.hbm [shape: f32[8,128], index: 3, kind: output, shape index: {}]  }
   0x1   :  { %v26_v0 = vld [vmem:[%s762_s1 + $0x18] sm:$0xff]  ;;  %v25_v1 = vld [vmem:[%s762_s1 + $0x10] sm:$0xff]  ;;  %v15_v2 = vld [vmem:[%s761_s0] sm:$0xff] }
   0x2   :  { %434 = vmatprep.subr.mxu0 %v26_v0  ;;  %454 = vmatprep.subr.mxu1 %v26_v0  ;;  %v24_v3 = vld [vmem:[%s762_s1 + $0x8] sm:$0xff]  ;;  %v23_v4 = vld [vmem:[%s762_s1] sm:$0xff] }
   0x3   :  { %435 = vmatpush3.msra.mxu0 %v26_v0  ;;  %458 = vmatpush3.msra.mxu1 %v26_v0 }
   0x4   :  { %436 = vmatprep.subr.mxu0 %v25_v1  ;;  %442 = vmatprep.mubr.msk.f32.mxu0 %vm34_vm0, %v15_v2 }
   0x5   :  { %437 = vmatpush3.msra.mxu0 %v25_v1  ;;  %455 = vmatprep.subr.mxu1 %v25_v1 }
   0x6   :  { %8 = vsyncpa [#allocation3], 0  ;;  %438 = vmatprep.subr.mxu0 %v24_v3  ;;  %459 = vmatpush3.msra.mxu1 %v25_v1  ;;  %v16_v5 = vld [vmem:[%s761_s0 + $0x8] sm:$0xff]  ;;  %v17_v6 = vld [vmem:[%s761_s0 + $0x10] sm:$0xff]  ;;  %vm245_vm1 = vcmask 1041409   ;;  %vm248_vm2 = vcmask 1042434  }
   0x7   :  { %439 = vmatpush3.msra.mxu0 %v24_v3  ;;  %456 = vmatprep.subr.mxu1 %v24_v3  ;;  %v19_v7 = vld [vmem:[%s761_s0 + $0x20] sm:$0xff]  ;;  %v20_v8 = vld [vmem:[%s761_s0 + $0x28] sm:$0xff]  ;;  %v21_v9 = vld [vmem:[%s761_s0 + $0x30] sm:$0xff]  ;;  %vm251_vm3 = vcmask 1043459   ;;  %vm254_vm4 = vcmask 1044484   ;;  %vm257_vm5 = vcmask 1045509  }
   0x8   :  { %440 = vmatprep.subr.mxu0 %v23_v4  ;;  %460 = vmatpush3.msra.mxu1 %v24_v3  ;;  %v18_v10 = vld [vmem:[%s761_s0 + $0x18] sm:$0xff]  ;;  %v413_v12 = vld [vmem:[%s763_s2] ss:$0 sm:$0xff]  ;;  %vm260_vm6 = vcmask 1046534   ;;  %vm263_vm7 = vcmask 1047559   ;;  %s525_s2 = smov 16  }
   0x9   :  { %441 = vmatpush3.msra.mxu0 %v23_v4  ;;  %457 = vmatprep.subr.mxu1 %v23_v4  ;;  %v22_v11 = vld [vmem:[%s761_s0 + $0x38] sm:$0xff]  ;;  %s524_s0 = smov 32   ;;  %s526_s10 = smov 48   ;;  %vm385_vm8 = vcmask 130048   ;;  %vm388_vm9 = vcmask 392192   ;;  %vm390_vm10 = vcmask 523264  }
   0xa   :  { %443 = vmatmul.mubr.msk.f32.vlgmr.msra.gmra.mxu0 %vm34_vm0, %v16_v5  ;;  %461 = vmatpush3.msra.mxu1 %v23_v4  ;;  %s527_s11 = smov 80   ;;  %s528_s12 = smov 64   ;;  %vm392_vm11 = vcmask 654336   ;;  %vm394_vm12 = vcmask 785408   ;;  %vm396_vm13 = vcmask 916480  }
   0xb   :  { %445 = vmatprep.mubr.msk.f32.mxu0 %vm34_vm0, %v17_v6  ;;  %448 = vmatprep.mubr.msk.f32.mxu1 %vm34_vm0, %v19_v7  ;;  %s529_s13 = smov 112   ;;  %s530_s14 = smov 96  }
   0xc   :  { %449 = vmatmul.mubr.msk.f32.vlgmr.msra.gmra.mxu1 %vm34_vm0, %v20_v8  ;;  %s531_s15 = smov [#allocation2]  }
   0xd   :  { %451 = vmatprep.mubr.msk.f32.mxu1 %vm34_vm0, %v21_v9  ;;  %s405_s16 = sshll.u32 %s531_s15, 4  ;;  %s406_s16 = int_to_ptr.vmem [resolvable:$true] %s405_s16 }
   0xe   :  { %446 = vmatmul.mubr.msk.f32.gmra.mxu0 %vm34_vm0, %v18_v10  ;;  %s502_s17 = scalar_lea.vmem %s406_s16, 128  ;;  %p507_p1 = scmp.lt.s32.totalorder %s406_s16, %s406_s16 }
   0xf   :  { %p503_p0 = scmp.ne.s32.totalorder %s406_s16, %s502_s17  ;;  %p508_p2 = scmp.lt.s32.totalorder %s502_s17, %s502_s17 }
  0x10   :  { %452 = vmatmul.mubr.msk.f32.gmra.mxu1 %vm34_vm0, %v22_v11 }
  0x11   :  { %p509_p3 = por %p508_p2, %p507_p1 }
  0x13   :  { %p510_p4 = pnand %p509_p3, %p503_p0 }
  0xca   :  { %v444_v13 = vpop.f32.mrf.mxu0 }
  0xcb   :  { %v131_v14 = vadd.f32 %v444_v13, %v413_v12 }
  0xcc   :  { %v125_v15 = vpop.f32.mrf.mxu0  ;;  %v450_v16 = vpop.f32.mrf.mxu1 }
  0xcd   :  { %166 = vmax.xlane.f32.xlu0 %v131_v14  ;;  %v126_v19 = vadd.f32 %v413_v12, %v125_v15  ;;  %v151_v27 = vadd.f32 %v450_v16, %v413_v12 }
  0xce   :  { %v447_v17 = vpop.f32.mrf.mxu0  ;;  %v145_v18 = vpop.f32.mrf.mxu1 }
  0xcf   :  { %v141_v20 = vadd.f32 %v447_v17, %v413_v12  ;;  %v146_v23 = vadd.f32 %v413_v12, %v145_v18 }
  0xd0   :  { %v135_v21 = vpop.f32.mrf.mxu0  ;;  %v453_v22 = vpop.f32.mrf.mxu1 }
  0xd1   :  { %170 = vmax.xlane.f32.xlu1 %v141_v20  ;;  %164 = vmax.xlane.f32.xlu0 %v126_v19  ;;  %v136_v25 = vadd.f32 %v413_v12, %v135_v21  ;;  %v161_v28 = vadd.f32 %v453_v22, %v413_v12 }
  0xd2   :  { %v155_v24 = vpop.f32.mrf.mxu1 }
  0xd3   :  { %v156_v26 = vadd.f32 %v413_v12, %v155_v24 }
  0xd5   :  { %168 = vmax.xlane.f32.xlu1 %v136_v25  ;;  %172 = vmax.xlane.f32.xlu0 %v146_v23 }
  0xd9   :  { %174 = vmax.xlane.f32.xlu1 %v151_v27  ;;  %176 = vmax.xlane.f32.xlu0 %v156_v26 }
  0xdd   :  { %178 = vmax.xlane.f32.xlu1 %v161_v28 }
 0x156   :  { %v167_v29 = vpop.xlane.xlu0 %166 }
 0x157   :  { %v181_v30 = vsub.f32 %v131_v14, %v167_v29 }
 0x159   :  { %v190_v31 = vmul.f32 1.442695, %v181_v30 }
 0x15a   :  { %v171_v32 = vpop.xlane.xlu1 %170  ;;  %v165_v33 = vpop.xlane.xlu0 %164 }
 0x15b   :  { %470 = vpow2.f32 %v190_v31  ;;  %v180_v34 = vsub.f32 %v126_v19, %v165_v33  ;;  %v183_v43 = vsub.f32 %v141_v20, %v171_v32 }
 0x15d   :  { %v188_v35 = vmul.f32 1.442695, %v180_v34  ;;  %v194_v49 = vmul.f32 1.442695, %v183_v43 }
 0x15e   :  { %v169_v36 = vpop.xlane.xlu1 %168  ;;  %v173_v37 = vpop.xlane.xlu0 %172 }
 0x15f   :  { %v184_v38 = vsub.f32 %v146_v23, %v173_v37  ;;  %472 = vpow2.f32 %v188_v35  ;;  %v182_v39 = vsub.f32 %v136_v25, %v169_v36 }
 0x161   :  { %v196_v40 = vmul.f32 1.442695, %v184_v38  ;;  %v192_v45 = vmul.f32 1.442695, %v182_v39 }
 0x162   :  { %v175_v41 = vpop.xlane.xlu1 %174  ;;  %v177_v42 = vpop.xlane.xlu0 %176 }
 0x163   :  { %v185_v44 = vsub.f32 %v151_v27, %v175_v41  ;;  %474 = vpow2.f32 %v196_v40  ;;  %v186_v46 = vsub.f32 %v156_v26, %v177_v42 }
 0x165   :  { %v198_v47 = vmul.f32 1.442695, %v185_v44  ;;  %v200_v52 = vmul.f32 1.442695, %v186_v46 }
 0x166   :  { %v179_v48 = vpop.xlane.xlu1 %178 }
 0x167   :  { %476 = vpow2.f32 %v198_v47  ;;  %v187_v50 = vsub.f32 %v161_v28, %v179_v48 }
 0x168   :  { %v471_v51 = vpop.eup %470  ;;  %478 = vpow2.f32 %v192_v45 }
 0x169   :  { %206 = vadd.xlane.f32.xlu1 %v471_v51  ;;  %480 = vpow2.f32 %v194_v49  ;;  %v202_v53 = vmul.f32 1.442695, %v187_v50 }
 0x16a   :  { %482 = vpow2.f32 %v200_v52 }
 0x16b   :  { %484 = vpow2.f32 %v202_v53 }
 0x16c   :  { %v473_v54 = vpop.eup %472 }
 0x16d   :  { %204 = vadd.xlane.f32.xlu0 %v473_v54 }
 0x170   :  { %v475_v55 = vpop.eup %474 }
 0x171   :  { %212 = vadd.xlane.f32.xlu0 %v475_v55 }
 0x174   :  { %v599_v56 = vpop.eup %476 }
 0x175   :  { %v601_v57 = vpop.eup %478  ;;  %214 = vadd.xlane.f32.xlu1 %v599_v56 }
 0x176   :  { %208 = vadd.xlane.f32.xlu0 %v601_v57  ;;  %v605_v58 = vpop.eup %480 }
 0x177   :  { %v607_v59 = vpop.eup %482 }
 0x178   :  { %v611_v60 = vpop.eup %484 }
 0x179   :  { %210 = vadd.xlane.f32.xlu1 %v605_v58 }
 0x17a   :  { %216 = vadd.xlane.f32.xlu0 %v607_v59 }
 0x17d   :  { %218 = vadd.xlane.f32.xlu1 %v611_v60 }
 0x1f2   :  { %v207_v61 = vpop.xlane.xlu1 %206 }
 0x1f3   :  { %486 = vrcp.f32 %v207_v61 }
 0x1f6   :  { %v205_v62 = vpop.xlane.xlu0 %204 }
 0x1f7   :  { %488 = vrcp.f32 %v205_v62 }
 0x1fa   :  { %v213_v63 = vpop.xlane.xlu0 %212 }
 0x1fb   :  { %490 = vrcp.f32 %v213_v63 }
 0x1fe   :  { %v215_v0 = vpop.xlane.xlu1 %214 }
 0x1ff   :  { %492 = vrcp.f32 %v215_v0  ;;  %v209_v1 = vpop.xlane.xlu0 %208 }
 0x200   :  { %v487_v2 = vpop.eup %486  ;;  %494 = vrcp.f32 %v209_v1 }
 0x201   :  { %v223_v3 = vmul.f32 %v487_v2, %v471_v51 }
 0x202   :  { %v211_v4 = vpop.xlane.xlu1 %210 }
 0x203   :  { %496 = vrcp.f32 %v211_v4  ;;  %v217_v5 = vpop.xlane.xlu0 %216  ;;  %v284_v9 = vrot.slane %v223_v3, 1  ;;  %v301_v10 = vrot.slane %v223_v3, 2  ;;  %v335_v11 = vrot.slane %v223_v3, 4 }
 0x204   :  { %498 = vrcp.f32 %v217_v5  ;;  %v489_v6 = vpop.eup %488  ;;  %v244_v12 = vrot.slane %v223_v3, 7  ;;  %v318_v23 = vrot.slane %v223_v3, 3  ;;  %v369_v24 = vrot.slane %v223_v3, 6 }
 0x205   :  { %v221_v7 = vmul.f32 %v489_v6, %v473_v54  ;;  %v352_v25 = vrot.slane %v223_v3, 5 }
 0x206   :  { %v219_v8 = vpop.xlane.xlu1 %218 }
 0x207   :  { %500 = vrcp.f32 %v219_v8  ;;  %v283_v13 = vrot.slane %v221_v7, 2  ;;  %v266_v14 = vrot.slane %v221_v7, 1  ;;  %v300_v15 = vrot.slane %v221_v7, 3 }
 0x208   :  { %v334_v16 = vrot.slane %v221_v7, 5  ;;  %v491_v17 = vpop.eup %490  ;;  %v317_v18 = vrot.slane %v221_v7, 4  ;;  %v368_v19 = vrot.slane %v221_v7, 7  ;;  %v351_v20 = vrot.slane %v221_v7, 6 }
 0x209   :  { %v615_v21 = vsel %vm245_vm1, %v244_v12, %v221_v7  ;;  %v617_v22 = vmul.f32 %v491_v17, %v475_v55  ;;  %v285_v26 = vsel %vm245_vm1, %v284_v9, %v283_v13  ;;  %v267_v27 = vsel %vm245_vm1, %v223_v3, %v266_v14 }
 0x20a   :  { %v302_v28 = vsel %vm245_vm1, %v301_v10, %v300_v15  ;;  %v336_v29 = vsel %vm245_vm1, %v335_v11, %v334_v16  ;;  %v625_v32 = vsel %vm245_vm1, %v318_v23, %v317_v18  ;;  %v628_v33 = vsel %vm245_vm1, %v369_v24, %v368_v19 }
 0x20b   :  { %v289_v31 = vrot.slane %v617_v22, 6  ;;  %v631_v34 = vsel %vm245_vm1, %v352_v25, %v351_v20  ;;  %v272_v37 = vrot.slane %v617_v22, 5  ;;  %v306_v38 = vrot.slane %v617_v22, 7 }
 0x20c   :  { %v493_v30 = vpop.eup %492  ;;  %v341_v39 = vrot.slane %v617_v22, 1  ;;  %v375_v41 = vrot.slane %v617_v22, 3  ;;  %v358_v42 = vrot.slane %v617_v22, 2  ;;  %v253_v43 = vrot.slane %v617_v22, 4 }
 0x20d   :  { %v495_v35 = vpop.eup %494  ;;  %v634_v36 = vmul.f32 %v493_v30, %v599_v56 }
 0x20e   :  { %v640_v40 = vmul.f32 %v495_v35, %v601_v57 }
 0x20f   :  { %v291_v44 = vrot.slane %v634_v36, 5  ;;  %v274_v45 = vrot.slane %v634_v36, 4  ;;  %v308_v46 = vrot.slane %v634_v36, 6  ;;  %v325_v47 = vrot.slane %v634_v36, 7 }
 0x210   :  { %v497_v48 = vpop.eup %496  ;;  %v286_v49 = vsel %vm248_vm2, %v640_v40, %v285_v26  ;;  %v268_v50 = vrot.slane %v640_v40, 7  ;;  %v303_v51 = vrot.slane %v640_v40, 1  ;;  %v337_v52 = vrot.slane %v640_v40, 3 }
 0x211   :  { %v499_v53 = vpop.eup %498  ;;  %v655_v54 = vmul.f32 %v497_v48, %v605_v58  ;;  %v320_v55 = vrot.slane %v640_v40, 2  ;;  %v371_v56 = vrot.slane %v640_v40, 5  ;;  %v377_v57 = vrot.slane %v634_v36, 2 }
 0x212   :  { %v661_v61 = vmul.f32 %v499_v53, %v607_v59  ;;  %v269_v62 = vsel %vm248_vm2, %v268_v50, %v267_v27  ;;  %v304_v63 = vsel %vm248_vm2, %v303_v51, %v302_v28  ;;  %v338_v0 = vsel %vm248_vm2, %v337_v52, %v336_v29 }
 0x213   :  { %v287_v1 = vrot.slane %v655_v54, 7  ;;  %v270_v58 = vrot.slane %v655_v54, 6  ;;  %v305_v2 = vsel %vm251_vm3, %v655_v54, %v304_v63  ;;  %v339_v3 = vrot.slane %v655_v54, 2 }
 0x214   :  { %v501_v4 = vpop.eup %500  ;;  %v293_v5 = vrot.slane %v661_v61, 4  ;;  %v276_v59 = vrot.slane %v661_v61, 3  ;;  %v307_v6 = vsel %vm254_vm4, %v306_v38, %v305_v2  ;;  %v310_v7 = vrot.slane %v661_v61, 5 }
 0x215   :  { %v676_v8 = vmul.f32 %v501_v4, %v611_v60  ;;  %v288_v9 = vsel %vm251_vm3, %v287_v1, %v286_v49  ;;  %v271_v10 = vsel %vm251_vm3, %v270_v58, %v269_v62  ;;  %v309_v11 = vsel %vm257_vm5, %v308_v46, %v307_v6 }
 0x216   :  { %v290_v12 = vsel %vm254_vm4, %v289_v31, %v288_v9  ;;  %v273_v13 = vsel %vm254_vm4, %v272_v37, %v271_v10  ;;  %v311_v14 = vsel %vm260_vm6, %v310_v7, %v309_v11  ;;  %v340_v15 = vsel %vm251_vm3, %v339_v3, %v338_v0 }
 0x217   :  { %v292_v16 = vsel %vm257_vm5, %v291_v44, %v290_v12  ;;  %v295_v17 = vrot.slane %v676_v8, 3  ;;  %v275_v60 = vsel %vm257_vm5, %v274_v45, %v273_v13  ;;  %v278_v18 = vrot.slane %v676_v8, 2 }
 0x218   :  { %v294_v19 = vsel %vm260_vm6, %v293_v5, %v292_v16  ;;  %v277_v20 = vsel %vm260_vm6, %v276_v59, %v275_v60  ;;  %v312_v23 = vrot.slane %v676_v8, 4  ;;  %v342_v24 = vsel %vm254_vm4, %v341_v39, %v340_v15 }
 0x219   :  { %v296_v25 = vsel %vm263_vm7, %v295_v17, %v294_v19  ;;  %v279_v26 = vsel %vm263_vm7, %v278_v18, %v277_v20  ;;  %v343_v27 = vsel %vm257_vm5, %v634_v36, %v342_v24  ;;  %v344_v28 = vrot.slane %v661_v61, 7 }
 0x21a   :  { %297 = vrot.lane.b32.xlu1 %v296_v25, %s524_s0  ;;  %280 = vrot.lane.b32.xlu0 %v279_v26, %s525_s2  ;;  %v313_v29 = vsel %vm263_vm7, %v312_v23, %v311_v14  ;;  %v346_v30 = vrot.slane %v676_v8, 6  ;;  %v321_v31 = vsel %vm248_vm2, %v320_v55, %v625_v32  ;;  %v322_v35 = vrot.slane %v655_v54, 1 }
 0x21b   :  { %v345_v37 = vsel %vm260_vm6, %v344_v28, %v343_v27  ;;  %v327_v38 = vrot.slane %v661_v61, 6  ;;  %v329_v39 = vrot.slane %v676_v8, 5  ;;  %v372_v44 = vsel %vm248_vm2, %v371_v56, %v628_v33 }
 0x21c   :  { %v347_v45 = vsel %vm263_vm7, %v346_v30, %v345_v37  ;;  %v323_v46 = vsel %vm251_vm3, %v322_v35, %v321_v31  ;;  %v373_v48 = vrot.slane %v655_v54, 4  ;;  %v379_v49 = vrot.slane %v661_v61, 1 }
 0x21d   :  { %v324_v32 = vsel %vm254_vm4, %v617_v22, %v323_v46  ;;  %v354_v50 = vrot.slane %v640_v40, 4  ;;  %v356_v51 = vrot.slane %v655_v54, 3  ;;  %v360_v52 = vrot.slane %v634_v36, 1 }
 0x21e   :  { %314 = vrot.lane.b32.xlu1 %v313_v29, %s526_s10  ;;  %348 = vrot.lane.b32.xlu0 %v347_v45, %s527_s11  ;;  %v326_v33 = vsel %vm257_vm5, %v325_v47, %v324_v32  ;;  %v374_v53 = vsel %vm251_vm3, %v373_v48, %v372_v44  ;;  %v363_v55 = vrot.slane %v676_v8, 7  ;;  %v247_v56 = vrot.slane %v640_v40, 6 }
 0x21f   :  { %v328_v62 = vsel %vm260_vm6, %v327_v38, %v326_v33  ;;  %v376_v63 = vsel %vm254_vm4, %v375_v41, %v374_v53  ;;  %v355_v0 = vsel %vm248_vm2, %v354_v50, %v631_v34  ;;  %v250_v1 = vrot.slane %v655_v54, 5 }
 0x220   :  { %v330_v58 = vsel %vm263_vm7, %v329_v39, %v328_v62  ;;  %v378_v47 = vsel %vm257_vm5, %v377_v57, %v376_v63  ;;  %v357_v2 = vsel %vm251_vm3, %v356_v51, %v355_v0  ;;  %v249_v40 = vsel %vm248_vm2, %v247_v56, %v615_v21 }
 0x221   :  { %v380_v3 = vsel %vm260_vm6, %v379_v49, %v378_v47  ;;  %v359_v41 = vsel %vm254_vm4, %v358_v42, %v357_v2  ;;  %v252_v34 = vsel %vm251_vm3, %v250_v1, %v249_v40  ;;  %v256_v54 = vrot.slane %v634_v36, 3 }
 0x222   :  { %331 = vrot.lane.b32.xlu1 %v330_v58, %s528_s12  ;;  %v381_v57 = vsel %vm263_vm7, %v676_v8, %v380_v3  ;;  %v361_v4 = vsel %vm257_vm5, %v360_v52, %v359_v41  ;;  %v255_v21 = vsel %vm254_vm4, %v253_v43, %v252_v34  ;;  %v262_v5 = vrot.slane %v676_v8, 1 }
 0x223   :  { %382 = vrot.lane.b32.xlu0 %v381_v57, %s529_s13  ;;  %v362_v42 = vsel %vm260_vm6, %v661_v61, %v361_v4  ;;  %v258_v36 = vsel %vm257_vm5, %v256_v54, %v255_v21  ;;  %v259_v59 = vrot.slane %v661_v61, 2 }
 0x224   :  { %v364_v6 = vsel %vm263_vm7, %v363_v55, %v362_v42 }
 0x225   :  { %v261_v7 = vsel %vm260_vm6, %v259_v59, %v258_v36 }
 0x226   :  { %365 = vrot.lane.b32.xlu1 %v364_v6, %s530_s14  ;;  %v264_v22 = vsel %vm263_vm7, %v262_v5, %v261_v7 }
 0x28c   :  { %v298_v43 = vpop.permute.xlu1 %297  ;;  %v281_v8 = vpop.permute.xlu0 %280 }
 0x28d   :  { %v386_v9 = vsel %vm385_vm8, %v264_v22, %v281_v8 }
 0x28e   :  { %v387_v11 = vsel %vm34_vm0, %v386_v9, %v298_v43 }
 0x290   :  { %v315_v10 = vpop.permute.xlu1 %314  ;;  %v349_v12 = vpop.permute.xlu0 %348 }
 0x291   :  { %v389_v13 = vsel %vm388_vm9, %v387_v11, %v315_v10 }
 0x294   :  { %v332_v61 = vpop.permute.xlu1 %331 }
 0x295   :  { %v391_v14 = vsel %vm390_vm10, %v389_v13, %v332_v61  ;;  %v383_v17 = vpop.permute.xlu0 %382 }
 0x296   :  { %v393_v16 = vsel %vm392_vm11, %v391_v14, %v349_v12 }
 0x298   :  { %v366_v15 = vpop.permute.xlu1 %365 }
 0x299   :  { %v395_v60 = vsel %vm394_vm12, %v393_v16, %v366_v15 }
 0x29a   :  { %v397_v18 = vsel %vm396_vm13, %v395_v60, %v383_v17 }
 0x29b   :  { %398 = vst [vmem:[#allocation2] sm:$0xff] %v397_v18 }
 0x29c   :  { %513 = shalt.err (!%p510_p4)
}
 0x29d   :  { %408 = dma.vmem_to_hbm [thread:$0]  %s406_s16, 128, %s764_s3, [#allocation3]  }
 0x29e   :  { %522 = dma.done.wait [#allocation3], 128  }
 0x29f   :  { %523 = vsyncadd [#allocation3], 4294967168 }
 0x2a0   :  { %412 = vsyncpa [#allocation3], 1 }

</bundles_post_ra>
